<compile_context>
chip_gen: v6e
topology: v6e:2x2x1
jax: 0.10.0
libtpu: 0.0.40
codegen_flags: <defaults>
</compile_context>

<pallas_src>
import functools

import jax
import jax.numpy as jnp
from jax.experimental import pallas as pl
from jax.experimental.pallas import tpu as pltpu

_NEG = -1.0e30  # padding value for unused logit lanes (vanishes in softmax)


def _round_up(x, m):
    return ((x + m - 1) // m) * m


def rnn_seq_kernel(x_ref, h0_ref, wxh_ref, whh_ref, bh_ref,
                   wxo_ref, who_ref, bo_ref,
                   logp_ref, hfin_ref, h_scratch):
    t = pl.program_id(0)

    # Initialize the resident hidden-state carry from the caller's h0.
    @pl.when(t == 0)
    def _():
        h_scratch[...] = h0_ref[...]

    x = x_ref[0]              # (B_pad, I_pad)
    h = h_scratch[...]        # (B_pad, H_pad)

    # hidden = i2h(cat(x, h))  ==  x @ Wxh + h @ Whh + bh   (no concat needed)
    new_h = (jnp.dot(x, wxh_ref[...], preferred_element_type=jnp.float32)
             + jnp.dot(h, whh_ref[...], preferred_element_type=jnp.float32)
             + bh_ref[...])

    # logits = i2o(cat(x, h))
    logits = (jnp.dot(x, wxo_ref[...], preferred_element_type=jnp.float32)
              + jnp.dot(h, who_ref[...], preferred_element_type=jnp.float32)
              + bo_ref[...])

    # LogSoftmax(dim=1), numerically stable. Padded lanes carry -1e30 bias so
    # exp() underflows to 0 and they do not perturb the denominator.
    m = jnp.max(logits, axis=1, keepdims=True)
    shifted = logits - m
    lse = jnp.log(jnp.sum(jnp.exp(shifted), axis=1, keepdims=True))

    logp_ref[0] = (shifted - lse).astype(logp_ref.dtype)
    h_scratch[...] = new_h
    hfin_ref[...] = new_h.astype(hfin_ref.dtype)


def rnn_forward_sequence(xs, h0, w_i2h, b_i2h, w_i2o, b_i2o):
    """Run the RNN cell over a whole sequence inside one Pallas kernel.

    xs    : (T, B, input_size)  float32
    h0    : (B, hidden_size)    float32
    w_i2h : (input_size+hidden_size, hidden_size)   (pre-transposed)
    b_i2h : (1, hidden_size)
    w_i2o : (input_size+hidden_size, output_size)   (pre-transposed)
    b_i2o : (1, output_size)
    returns (log_probs (T, B, output_size), final_hidden (B, hidden_size))
    """
    T, B, input_size = xs.shape
    hidden_size = w_i2h.shape[1]
    output_size = w_i2o.shape[1]

    # Padded (hardware-friendly) sizes.
    B_pad = _round_up(max(B, 8), 8)
    I_pad = _round_up(input_size, 128)
    H_pad = _round_up(hidden_size, 128)
    O_pad = _round_up(output_size, 128)

    f32 = jnp.float32

    # --- pad activations -------------------------------------------------
    xs_p = jnp.pad(xs.astype(f32),
                   ((0, 0), (0, B_pad - B), (0, I_pad - input_size)))
    h0_p = jnp.pad(h0.astype(f32),
                   ((0, B_pad - B), (0, H_pad - hidden_size)))

    # --- split + pad weights (zero padding keeps math exact) -------------
    wxh = jnp.pad(w_i2h[:input_size, :].astype(f32),
                  ((0, I_pad - input_size), (0, H_pad - hidden_size)))
    whh = jnp.pad(w_i2h[input_size:, :].astype(f32),
                  ((0, H_pad - hidden_size), (0, H_pad - hidden_size)))
    bh_p = jnp.pad(b_i2h.astype(f32), ((0, 0), (0, H_pad - hidden_size)))

    wxo = jnp.pad(w_i2o[:input_size, :].astype(f32),
                  ((0, I_pad - input_size), (0, O_pad - output_size)))
    who = jnp.pad(w_i2o[input_size:, :].astype(f32),
                  ((0, H_pad - hidden_size), (0, O_pad - output_size)))
    # Padded logit lanes get a huge negative bias so softmax ignores them.
    bo_p = jnp.pad(b_i2o.astype(f32), ((0, 0), (0, O_pad - output_size)),
                   constant_values=_NEG)

    # --- BlockSpecs -------------------------------------------------------
    x_spec = pl.BlockSpec((1, B_pad, I_pad), lambda t: (t, 0, 0))
    const2 = lambda shape: pl.BlockSpec(shape, lambda t: (0, 0))

    in_specs = [
        x_spec,
        const2((B_pad, H_pad)),      # h0
        const2((I_pad, H_pad)),      # wxh   (resident across all T steps)
        const2((H_pad, H_pad)),      # whh
        const2((1, H_pad)),          # bh
        const2((I_pad, O_pad)),      # wxo
        const2((H_pad, O_pad)),      # who
        const2((1, O_pad)),          # bo
    ]
    out_specs = (
        pl.BlockSpec((1, B_pad, O_pad), lambda t: (t, 0, 0)),   # per-step logp
        const2((B_pad, H_pad)),                                 # final hidden
    )
    out_shapes = (
        jax.ShapeDtypeStruct((T, B_pad, O_pad), f32),
        jax.ShapeDtypeStruct((B_pad, H_pad), f32),
    )

    in_bytes = (xs_p.size + h0_p.size + wxh.size + whh.size + bh_p.size
                + wxo.size + who.size + bo_p.size) * 4
    out_bytes = (T * B_pad * O_pad + B_pad * H_pad) * 4
    cost = pl.CostEstimate(
        flops=2 * T * B_pad * (I_pad + H_pad) * (H_pad + O_pad),
        transcendentals=T * B_pad * (O_pad + 1),
        bytes_accessed=in_bytes + out_bytes,
    )

    logp_p, hfin_p = pl.pallas_call(
        rnn_seq_kernel,
        out_shape=out_shapes,
        grid=(T,),
        in_specs=in_specs,
        out_specs=out_specs,
        scratch_shapes=[pltpu.VMEM((B_pad, H_pad), f32)],
        compiler_params=pltpu.CompilerParams(
            dimension_semantics=("arbitrary",)),
        cost_estimate=cost,
    )(xs_p, h0_p, wxh, whh, bh_p, wxo, who, bo_p)

    return (logp_p[:, :B, :output_size], hfin_p[:B, :hidden_size])


def rnn_forward(x, h, w_i2h, b_i2h, w_i2o, b_i2o):
    """Single-step forward matching the PyTorch module exactly."""
    logp, new_h = rnn_forward_sequence(x[None], h, w_i2h, b_i2h, w_i2o, b_i2o)
    return logp[0], new_h


def init_params(key, input_size, hidden_size, output_size):
    """Deterministic parameter init (PyTorch Linear-style uniform bounds)."""
    k1, k2, k3, k4 = jax.random.split(key, 4)
    in_features = input_size + hidden_size
    bound = 1.0 / jnp.sqrt(in_features)
    # Stored already transposed: (in_features, out_features)
    w_i2h = jax.random.uniform(k1, (in_features, hidden_size), jnp.float32,
                               -bound, bound)
    b_i2h = jax.random.uniform(k2, (1, hidden_size), jnp.float32, -bound, bound)
    w_i2o = jax.random.uniform(k3, (in_features, output_size), jnp.float32,
                               -bound, bound)
    b_i2o = jax.random.uniform(k4, (1, output_size), jnp.float32, -bound, bound)
    return w_i2h, b_i2h, w_i2o, b_i2o


def reference_cell(x, h, w_i2h, b_i2h, w_i2o, b_i2o):
    combined = jnp.concatenate([x, h], axis=1)
    new_h = combined @ w_i2h + b_i2h
    logits = combined @ w_i2o + b_i2o
    return jax.nn.log_softmax(logits, axis=1), new_h


def reference_sequence(xs, h0, w_i2h, b_i2h, w_i2o, b_i2o):
    h = h0
    outs = []
    for t in range(xs.shape[0]):
        o, h = reference_cell(xs[t], h, w_i2h, b_i2h, w_i2o, b_i2o)
        outs.append(o)
    return jnp.stack(outs, axis=0), h


if __name__ == "__main__":
    input_size, hidden_size, output_size = 16, 32, 8
    batch, seq = 2, 8

    key = jax.random.PRNGKey(0)
    k_x, k_p = jax.random.split(key)

    xs = jax.random.normal(k_x, (seq, batch, input_size), dtype=jnp.float32)
    h0 = jnp.zeros((batch, hidden_size), dtype=jnp.float32)  # initHidden

    w_i2h, b_i2h, w_i2o, b_i2o = init_params(k_p, input_size, hidden_size,
                                             output_size)

    fused = jax.jit(rnn_forward_sequence)
    logp, h_fin = fused(xs, h0, w_i2h, b_i2h, w_i2o, b_i2o)
    jax.block_until_ready((logp, h_fin))

    ref_logp, ref_h = reference_sequence(xs, h0, w_i2h, b_i2h, w_i2o, b_i2o)

    assert logp.shape == (seq, batch, output_size)
    assert h_fin.shape == (batch, hidden_size)
    assert jnp.allclose(logp, ref_logp, atol=1e-4, rtol=1e-4)
    assert jnp.allclose(h_fin, ref_h, atol=1e-4, rtol=1e-4)

    # Single-step path (module.forward) also matches.
    o1, h1 = rnn_forward(xs[0], h0, w_i2h, b_i2h, w_i2o, b_i2o)
    r1, rh1 = reference_cell(xs[0], h0, w_i2h, b_i2h, w_i2o, b_i2o)
    assert jnp.allclose(o1, r1, atol=1e-4, rtol=1e-4)
    assert jnp.allclose(h1, rh1, atol=1e-4, rtol=1e-4)

    print("KERNEL_OK")
</pallas_src>

<mosaic_0001>
module attributes {stable_mosaic.version = 11 : i64} {
  func.func @rnn_seq_kernel(%arg0: i32, %arg1: memref<1x8x128xf32, #tpu.memory_space<vmem>>, %arg2: memref<8x128xf32, #tpu.memory_space<vmem>>, %arg3: memref<128x128xf32, #tpu.memory_space<vmem>>, %arg4: memref<128x128xf32, #tpu.memory_space<vmem>>, %arg5: memref<1x128xf32, #tpu.memory_space<vmem>>, %arg6: memref<128x128xf32, #tpu.memory_space<vmem>>, %arg7: memref<128x128xf32, #tpu.memory_space<vmem>>, %arg8: memref<1x128xf32, #tpu.memory_space<vmem>>, %arg9: memref<1x8x128xf32, #tpu.memory_space<vmem>>, %arg10: memref<8x128xf32, #tpu.memory_space<vmem>>, %arg11: memref<8x128xf32, #tpu.memory_space<vmem>>) attributes {dimension_semantics = [#tpu.dimension_semantics<arbitrary>], iteration_bounds = array<i64: 8>, scalar_prefetch = 0 : i64, scratch_operands = 1 : i64, tpu.core_type = #tpu.core_type<tc>, window_params = [{transform_indices = @transform_0, window_bounds = array<i64: 1, 8, 128>}, {pipeline_mode = #tpu.pipeline_mode<synchronous>, transform_indices = @transform_1, window_bounds = array<i64: 8, 128>}, {pipeline_mode = #tpu.pipeline_mode<synchronous>, transform_indices = @transform_2, window_bounds = array<i64: 128, 128>}, {pipeline_mode = #tpu.pipeline_mode<synchronous>, transform_indices = @transform_3, window_bounds = array<i64: 128, 128>}, {pipeline_mode = #tpu.pipeline_mode<synchronous>, transform_indices = @transform_4, window_bounds = array<i64: 1, 128>}, {pipeline_mode = #tpu.pipeline_mode<synchronous>, transform_indices = @transform_5, window_bounds = array<i64: 128, 128>}, {pipeline_mode = #tpu.pipeline_mode<synchronous>, transform_indices = @transform_6, window_bounds = array<i64: 128, 128>}, {pipeline_mode = #tpu.pipeline_mode<synchronous>, transform_indices = @transform_7, window_bounds = array<i64: 1, 128>}, {transform_indices = @transform_8, window_bounds = array<i64: 1, 8, 128>}, {pipeline_mode = #tpu.pipeline_mode<synchronous>, transform_indices = @transform_9, window_bounds = array<i64: 8, 128>}]} {
    %c0_i32 = arith.constant 0 : i32
    %0 = arith.cmpi eq, %arg0, %c0_i32 : i32
    %1 = arith.extui %0 : i1 to i32
    %c0_i32_0 = arith.constant 0 : i32
    %2 = arith.cmpi ne, %1, %c0_i32_0 : i32
    scf.if %2 {
      %c0_29 = arith.constant 0 : index
      %c0_30 = arith.constant 0 : index
      %37 = vector.load %arg2[%c0_29, %c0_30] : memref<8x128xf32, #tpu.memory_space<vmem>>, vector<8x128xf32>
      %c0_31 = arith.constant 0 : index
      %c0_32 = arith.constant 0 : index
      %38 = vector.load %arg11[%c0_31, %c0_32] : memref<8x128xf32, #tpu.memory_space<vmem>>, vector<8x128xf32>
      tpu.vector_store %arg11[%c0_31, %c0_32], %37 {strides = array<i32>} : memref<8x128xf32, #tpu.memory_space<vmem>>, vector<8x128xf32>,
    } else {
    }
    %c0 = arith.constant 0 : index
    %c0_1 = arith.constant 0 : index
    %c0_2 = arith.constant 0 : index
    %3 = vector.load %arg1[%c0, %c0_1, %c0_2] : memref<1x8x128xf32, #tpu.memory_space<vmem>>, vector<1x8x128xf32>
    %4 = vector.shape_cast %3 : vector<1x8x128xf32> to vector<8x128xf32>
    %c0_3 = arith.constant 0 : index
    %c0_4 = arith.constant 0 : index
    %5 = vector.load %arg11[%c0_3, %c0_4] : memref<8x128xf32, #tpu.memory_space<vmem>>, vector<8x128xf32>
    %c0_5 = arith.constant 0 : index
    %c0_6 = arith.constant 0 : index
    %6 = vector.load %arg3[%c0_5, %c0_6] : memref<128x128xf32, #tpu.memory_space<vmem>>, vector<128x128xf32>
    %cst = arith.constant dense<0.000000e+00> : vector<8x128xf32>
    %7 = tpu.matmul %4, %6, %cst {dimension_numbers = #tpu.dot_dimension_numbers<[1], [0], [0], [1], [0, 0, 1, 1], [], []>} : vector<8x128xf32>, vector<128x128xf32>, vector<8x128xf32> -> vector<8x128xf32>
    %c0_7 = arith.constant 0 : index
    %c0_8 = arith.constant 0 : index
    %8 = vector.load %arg4[%c0_7, %c0_8] : memref<128x128xf32, #tpu.memory_space<vmem>>, vector<128x128xf32>
    %cst_9 = arith.constant dense<0.000000e+00> : vector<8x128xf32>
    %9 = tpu.matmul %5, %8, %cst_9 {dimension_numbers = #tpu.dot_dimension_numbers<[1], [0], [0], [1], [0, 0, 1, 1], [], []>} : vector<8x128xf32>, vector<128x128xf32>, vector<8x128xf32> -> vector<8x128xf32>
    %10 = arith.addf %7, %9 : vector<8x128xf32>
    %c0_10 = arith.constant 0 : index
    %c0_11 = arith.constant 0 : index
    %11 = vector.load %arg5[%c0_10, %c0_11] : memref<1x128xf32, #tpu.memory_space<vmem>>, vector<1x128xf32>
    %12 = vector.broadcast %11 : vector<1x128xf32> to vector<8x128xf32>
    %13 = arith.addf %10, %12 : vector<8x128xf32>
    %c0_12 = arith.constant 0 : index
    %c0_13 = arith.constant 0 : index
    %14 = vector.load %arg6[%c0_12, %c0_13] : memref<128x128xf32, #tpu.memory_space<vmem>>, vector<128x128xf32>
    %cst_14 = arith.constant dense<0.000000e+00> : vector<8x128xf32>
    %15 = tpu.matmul %4, %14, %cst_14 {dimension_numbers = #tpu.dot_dimension_numbers<[1], [0], [0], [1], [0, 0, 1, 1], [], []>} : vector<8x128xf32>, vector<128x128xf32>, vector<8x128xf32> -> vector<8x128xf32>
    %c0_15 = arith.constant 0 : index
    %c0_16 = arith.constant 0 : index
    %16 = vector.load %arg7[%c0_15, %c0_16] : memref<128x128xf32, #tpu.memory_space<vmem>>, vector<128x128xf32>
    %cst_17 = arith.constant dense<0.000000e+00> : vector<8x128xf32>
    %17 = tpu.matmul %5, %16, %cst_17 {dimension_numbers = #tpu.dot_dimension_numbers<[1], [0], [0], [1], [0, 0, 1, 1], [], []>} : vector<8x128xf32>, vector<128x128xf32>, vector<8x128xf32> -> vector<8x128xf32>
    %18 = arith.addf %15, %17 : vector<8x128xf32>
    %c0_18 = arith.constant 0 : index
    %c0_19 = arith.constant 0 : index
    %19 = vector.load %arg8[%c0_18, %c0_19] : memref<1x128xf32, #tpu.memory_space<vmem>>, vector<1x128xf32>
    %20 = vector.broadcast %19 : vector<1x128xf32> to vector<8x128xf32>
    %21 = arith.addf %18, %20 : vector<8x128xf32>
    %cst_20 = arith.constant dense<0xFF800000> : vector<8xf32>
    %22 = vector.multi_reduction <maximumf>, %21, %cst_20 [1] : vector<8x128xf32> to vector<8xf32>
    %23 = vector.shape_cast %22 : vector<8xf32> to vector<8x1xf32>
    %24 = vector.broadcast %23 : vector<8x1xf32> to vector<8x128xf32>
    %25 = arith.subf %21, %24 : vector<8x128xf32>
    %26 = math.exp %25 : vector<8x128xf32>
    %cst_21 = arith.constant dense<0.000000e+00> : vector<8xf32>
    %27 = vector.multi_reduction <add>, %26, %cst_21 [1] : vector<8x128xf32> to vector<8xf32>
    %28 = vector.shape_cast %27 : vector<8xf32> to vector<8x1xf32>
    %29 = math.log %28 : vector<8x1xf32>
    %30 = vector.broadcast %29 : vector<8x1xf32> to vector<8x128xf32>
    %31 = arith.subf %25, %30 : vector<8x128xf32>
    %c0_22 = arith.constant 0 : index
    %c0_23 = arith.constant 0 : index
    %c0_24 = arith.constant 0 : index
    %32 = vector.load %arg9[%c0_22, %c0_23, %c0_24] : memref<1x8x128xf32, #tpu.memory_space<vmem>>, vector<1x8x128xf32>
    %33 = vector.shape_cast %32 : vector<1x8x128xf32> to vector<8x128xf32>
    %34 = vector.shape_cast %31 : vector<8x128xf32> to vector<1x8x128xf32>
    tpu.vector_store %arg9[%c0_22, %c0_23, %c0_24], %34 {strides = array<i32>} : memref<1x8x128xf32, #tpu.memory_space<vmem>>, vector<1x8x128xf32>,
    %c0_25 = arith.constant 0 : index
    %c0_26 = arith.constant 0 : index
    %35 = vector.load %arg11[%c0_25, %c0_26] : memref<8x128xf32, #tpu.memory_space<vmem>>, vector<8x128xf32>
    tpu.vector_store %arg11[%c0_25, %c0_26], %13 {strides = array<i32>} : memref<8x128xf32, #tpu.memory_space<vmem>>, vector<8x128xf32>,
    %c0_27 = arith.constant 0 : index
    %c0_28 = arith.constant 0 : index
    %36 = vector.load %arg10[%c0_27, %c0_28] : memref<8x128xf32, #tpu.memory_space<vmem>>, vector<8x128xf32>
    tpu.vector_store %arg10[%c0_27, %c0_28], %13 {strides = array<i32>} : memref<8x128xf32, #tpu.memory_space<vmem>>, vector<8x128xf32>,
    return
  }
  func.func @transform_0(%arg0: i32) -> (i32, i32, i32) {
    %c0_i32 = arith.constant 0 : i32
    %c0_i32_0 = arith.constant 0 : i32
    %c0_i32_1 = arith.constant 0 : i32
    return %arg0, %c0_i32, %c0_i32_0 : i32, i32, i32
  }
  func.func @transform_1(%arg0: i32) -> (i32, i32) {
    %c0_i32 = arith.constant 0 : i32
    %c0_i32_0 = arith.constant 0 : i32
    %c0_i32_1 = arith.constant 0 : i32
    return %c0_i32, %c0_i32_0 : i32, i32
  }
  func.func @transform_2(%arg0: i32) -> (i32, i32) {
    %c0_i32 = arith.constant 0 : i32
    %c0_i32_0 = arith.constant 0 : i32
    %c0_i32_1 = arith.constant 0 : i32
    return %c0_i32, %c0_i32_0 : i32, i32
  }
  func.func @transform_3(%arg0: i32) -> (i32, i32) {
    %c0_i32 = arith.constant 0 : i32
    %c0_i32_0 = arith.constant 0 : i32
    %c0_i32_1 = arith.constant 0 : i32
    return %c0_i32, %c0_i32_0 : i32, i32
  }
  func.func @transform_4(%arg0: i32) -> (i32, i32) {
    %c0_i32 = arith.constant 0 : i32
    %c0_i32_0 = arith.constant 0 : i32
    %c0_i32_1 = arith.constant 0 : i32
    return %c0_i32, %c0_i32_0 : i32, i32
  }
  func.func @transform_5(%arg0: i32) -> (i32, i32) {
    %c0_i32 = arith.constant 0 : i32
    %c0_i32_0 = arith.constant 0 : i32
    %c0_i32_1 = arith.constant 0 : i32
    return %c0_i32, %c0_i32_0 : i32, i32
  }
  func.func @transform_6(%arg0: i32) -> (i32, i32) {
    %c0_i32 = arith.constant 0 : i32
    %c0_i32_0 = arith.constant 0 : i32
    %c0_i32_1 = arith.constant 0 : i32
    return %c0_i32, %c0_i32_0 : i32, i32
  }
  func.func @transform_7(%arg0: i32) -> (i32, i32) {
    %c0_i32 = arith.constant 0 : i32
    %c0_i32_0 = arith.constant 0 : i32
    %c0_i32_1 = arith.constant 0 : i32
    return %c0_i32, %c0_i32_0 : i32, i32
  }
  func.func @transform_8(%arg0: i32) -> (i32, i32, i32) {
    %c0_i32 = arith.constant 0 : i32
    %c0_i32_0 = arith.constant 0 : i32
    %c0_i32_1 = arith.constant 0 : i32
    return %arg0, %c0_i32, %c0_i32_0 : i32, i32, i32
  }
  func.func @transform_9(%arg0: i32) -> (i32, i32) {
    %c0_i32 = arith.constant 0 : i32
    %c0_i32_0 = arith.constant 0 : i32
    %c0_i32_1 = arith.constant 0 : i32
    return %c0_i32, %c0_i32_0 : i32, i32
  }
}

</mosaic_0001>

<bundles_post_ra>
// kernel: rnn_forward_sequence.1
= control target key start
LH: loop header
LB: loop body
LE: loop exit
PB: predicated region body
PF: predicated region fallthrough
CT: control target
= control target key end

     0   :  { %s1060_s30 = smov 0   ;;  %s1367_s0 = inlined_call_operand.vmem [shape: f32[8,8,128], index: 0, kind: input, shape index: {}]   ;;  %s1368_s1 = inlined_call_operand.vmem [shape: f32[8,128], index: 1, kind: input, shape index: {}]   ;;  %s1369_s2 = inlined_call_operand.vmem [shape: f32[128,128], index: 2, kind: input, shape index: {}]   ;;  %s1370_s3 = inlined_call_operand.vmem [shape: f32[128,128], index: 3, kind: input, shape index: {}]   ;;  %s1371_s4 = inlined_call_operand.vmem [shape: f32[1,128], index: 4, kind: input, shape index: {}]   ;;  %s1372_s5 = inlined_call_operand.vmem [shape: f32[128,128], index: 5, kind: input, shape index: {}]   ;;  %s1373_s6 = inlined_call_operand.vmem [shape: f32[128,128], index: 6, kind: input, shape index: {}]   ;;  %s1374_s7 = inlined_call_operand.vmem [shape: f32[1,128], index: 7, kind: input, shape index: {}]   ;;  %s1375_s8 = inlined_call_operand.vmem [shape: f32[8,8,128], index: 8, kind: output, shape index: {0}]   ;;  %s1376_s9 = inlined_call_operand.vmem [shape: f32[8,128], index: 9, kind: output, shape index: {1}]  }
   0x1 LB: > { %s766_s10 = sadd.s32 4294967295, %s1006_s30   ;;  %p770_p0 = scmp.ge.s32.totalorder %s1006_s30, 1  ;;  %s1006_s30 = sphi %s1060_s30, %s20_s30  }
   0x2   : > { %p284_p1 = scmp.lt.s32.totalorder %s1006_s30, 9 }
   0x4   : > { %p285_p2 = pnand %p770_p0, %p284_p1 }
   0x5   : > { %p318_p3 = scmp.lt.s32.totalorder (!%p285_p2), %s766_s10, 7  ;;  %p773_p4 = scmp.ne.s32.totalorder (!%p285_p2), %s766_s10, 0 }
   0x6   : > { %288 = sbr.rel (%p285_p2) target bundleno = 597 (0x255), region = 52 }
   0xb   : > { %s319_s11 = scalar_select %p318_p3, %s766_s10, 7 }
   0xc   : > { %329 = sbr.rel (%p773_p4) target bundleno = 19 (0x13), region = 56 }
   0xd   : > { %s771_s12 = sshll.u32 %s319_s11, 3 }
   0xe   : > { %s1071_s15 = scalar_lea.vmem %s1367_s0, %s771_s12  ;;  %s1076_s18 = scalar_lea.vmem %s1375_s8, %s771_s12 }
  0x11   : > { %v330_v0 = vld [vmem:[%s1368_s1] sm:$0xff] }
  0x12   : > { %331 = vst [vmem:[#allocation2] sm:$0xff] %v330_v0 }
  0x13 PF: > { %v365_v1 = vld [vmem:[%s1370_s3 + $0x78] sm:$0xff]  ;;  %v1008_v3 = vmov 0.0   ;;  %v364_v4 = vld [vmem:[%s1370_s3 + $0x70] sm:$0xff]  ;;  %v363_v6 = vld [vmem:[%s1370_s3 + $0x68] sm:$0xff]  ;;  %vm1009_vm0 = vmmov 0  }
  0x14   : > { %v349_v2 = vld [vmem:[%s1369_s2 + $0x78] sm:$0xff]  ;;  %846 = vmatprep.subr.mxu0 %v1008_v3  ;;  %881 = vmatprep.subr.mxu1 %v1008_v3  ;;  %v348_v5 = vld [vmem:[%s1369_s2 + $0x70] sm:$0xff]  ;;  %v347_v7 = vld [vmem:[%s1369_s2 + $0x68] sm:$0xff] }
  0x15   : > { %847 = vmatpush3.msra.mxu0 %v365_v1  ;;  %882 = vmatpush3.msra.mxu1 %v349_v2  ;;  %v362_v8 = vld [vmem:[%s1370_s3 + $0x60] sm:$0xff]  ;;  %v361_v10 = vld [vmem:[%s1370_s3 + $0x58] sm:$0xff]  ;;  %v360_v12 = vld [vmem:[%s1370_s3 + $0x50] sm:$0xff] }
  0x16   : > { %848 = vmatprep.subr.mxu0 %v1008_v3  ;;  %883 = vmatprep.subr.mxu1 %v1008_v3  ;;  %v346_v9 = vld [vmem:[%s1369_s2 + $0x60] sm:$0xff]  ;;  %v345_v11 = vld [vmem:[%s1369_s2 + $0x58] sm:$0xff]  ;;  %v344_v13 = vld [vmem:[%s1369_s2 + $0x50] sm:$0xff] }
  0x17   : > { %849 = vmatpush3.msra.mxu0 %v364_v4  ;;  %884 = vmatpush3.msra.mxu1 %v348_v5  ;;  %v359_v14 = vld [vmem:[%s1370_s3 + $0x48] sm:$0xff]  ;;  %v358_v16 = vld [vmem:[%s1370_s3 + $0x40] sm:$0xff]  ;;  %v357_v18 = vld [vmem:[%s1370_s3 + $0x38] sm:$0xff] }
  0x18   : > { %850 = vmatprep.subr.mxu0 %v1008_v3  ;;  %885 = vmatprep.subr.mxu1 %v1008_v3  ;;  %v343_v15 = vld [vmem:[%s1369_s2 + $0x48] sm:$0xff]  ;;  %v342_v17 = vld [vmem:[%s1369_s2 + $0x40] sm:$0xff]  ;;  %v341_v19 = vld [vmem:[%s1369_s2 + $0x38] sm:$0xff] }
  0x19   : > { %851 = vmatpush3.msra.mxu0 %v363_v6  ;;  %886 = vmatpush3.msra.mxu1 %v347_v7  ;;  %v356_v20 = vld [vmem:[%s1370_s3 + $0x30] sm:$0xff]  ;;  %v355_v22 = vld [vmem:[%s1370_s3 + $0x28] sm:$0xff]  ;;  %v354_v24 = vld [vmem:[%s1370_s3 + $0x20] sm:$0xff] }
  0x1a   : > { %852 = vmatprep.subr.mxu0 %v1008_v3  ;;  %887 = vmatprep.subr.mxu1 %v1008_v3  ;;  %v340_v21 = vld [vmem:[%s1369_s2 + $0x30] sm:$0xff]  ;;  %v339_v23 = vld [vmem:[%s1369_s2 + $0x28] sm:$0xff]  ;;  %v338_v25 = vld [vmem:[%s1369_s2 + $0x20] sm:$0xff] }
  0x1b   : > { %853 = vmatpush3.msra.mxu0 %v362_v8  ;;  %888 = vmatpush3.msra.mxu1 %v346_v9  ;;  %v353_v26 = vld [vmem:[%s1370_s3 + $0x18] sm:$0xff]  ;;  %v352_v28 = vld [vmem:[%s1370_s3 + $0x10] sm:$0xff]  ;;  %v351_v30 = vld [vmem:[%s1370_s3 + $0x8] sm:$0xff] }
  0x1c   : > { %854 = vmatprep.subr.mxu0 %v1008_v3  ;;  %889 = vmatprep.subr.mxu1 %v1008_v3  ;;  %v337_v27 = vld [vmem:[%s1369_s2 + $0x18] sm:$0xff]  ;;  %v336_v29 = vld [vmem:[%s1369_s2 + $0x10] sm:$0xff]  ;;  %v335_v31 = vld [vmem:[%s1369_s2 + $0x8] sm:$0xff] }
  0x1d   : > { %855 = vmatpush3.msra.mxu0 %v361_v10  ;;  %890 = vmatpush3.msra.mxu1 %v345_v11  ;;  %v350_v32 = vld [vmem:[%s1370_s3] sm:$0xff]  ;;  %v545_v36 = vld [vmem:[%s1373_s6 + $0x78] sm:$0xff]  ;;  %v544_v38 = vld [vmem:[%s1373_s6 + $0x70] sm:$0xff] }
  0x1e   : > { %856 = vmatprep.subr.mxu0 %v1008_v3  ;;  %891 = vmatprep.subr.mxu1 %v1008_v3  ;;  %v334_v33 = vld [vmem:[%s1369_s2] sm:$0xff]  ;;  %v529_v37 = vld [vmem:[%s1372_s5 + $0x78] sm:$0xff]  ;;  %v528_v39 = vld [vmem:[%s1372_s5 + $0x70] sm:$0xff] }
  0x1f   : > { %857 = vmatpush3.msra.mxu0 %v360_v12  ;;  %892 = vmatpush3.msra.mxu1 %v344_v13  ;;  %v1209_v34 = vld [vmem:[#allocation2] sm:$0xff]  ;;  %v543_v40 = vld [vmem:[%s1373_s6 + $0x68] sm:$0xff]  ;;  %v541_v44 = vld [vmem:[%s1373_s6 + $0x58] sm:$0xff] }
  0x20   : > { %858 = vmatprep.subr.mxu0 %v1008_v3  ;;  %893 = vmatprep.subr.mxu1 %v1008_v3  ;;  %v1212_v35 = vld [vmem:[%s1071_s15] sm:$0xff]  ;;  %v527_v41 = vld [vmem:[%s1372_s5 + $0x68] sm:$0xff]  ;;  %v525_v45 = vld [vmem:[%s1372_s5 + $0x58] sm:$0xff] }
  0x21   : > { %859 = vmatpush3.msra.mxu0 %v359_v14  ;;  %894 = vmatpush3.msra.mxu1 %v343_v15  ;;  %v542_v42 = vld [vmem:[%s1373_s6 + $0x60] sm:$0xff]  ;;  %v540_v46 = vld [vmem:[%s1373_s6 + $0x50] sm:$0xff]  ;;  %v539_v48 = vld [vmem:[%s1373_s6 + $0x48] sm:$0xff] }
  0x22   : > { %860 = vmatprep.subr.mxu0 %v1008_v3  ;;  %895 = vmatprep.subr.mxu1 %v1008_v3  ;;  %v526_v43 = vld [vmem:[%s1372_s5 + $0x60] sm:$0xff]  ;;  %v524_v47 = vld [vmem:[%s1372_s5 + $0x50] sm:$0xff]  ;;  %v523_v49 = vld [vmem:[%s1372_s5 + $0x48] sm:$0xff] }
  0x23   : > { %861 = vmatpush3.msra.mxu0 %v358_v16  ;;  %896 = vmatpush3.msra.mxu1 %v342_v17  ;;  %v538_v50 = vld [vmem:[%s1373_s6 + $0x40] sm:$0xff]  ;;  %v537_v52 = vld [vmem:[%s1373_s6 + $0x38] sm:$0xff]  ;;  %v536_v54 = vld [vmem:[%s1373_s6 + $0x30] sm:$0xff] }
  0x24   : > { %862 = vmatprep.subr.mxu0 %v1008_v3  ;;  %897 = vmatprep.subr.mxu1 %v1008_v3  ;;  %v522_v51 = vld [vmem:[%s1372_s5 + $0x40] sm:$0xff]  ;;  %v521_v53 = vld [vmem:[%s1372_s5 + $0x38] sm:$0xff]  ;;  %v520_v55 = vld [vmem:[%s1372_s5 + $0x30] sm:$0xff] }
  0x25   : > { %863 = vmatpush3.msra.mxu0 %v357_v18  ;;  %898 = vmatpush3.msra.mxu1 %v341_v19  ;;  %v535_v56 = vld [vmem:[%s1373_s6 + $0x28] sm:$0xff]  ;;  %v534_v58 = vld [vmem:[%s1373_s6 + $0x20] sm:$0xff]  ;;  %v533_v60 = vld [vmem:[%s1373_s6 + $0x18] sm:$0xff] }
  0x26   : > { %864 = vmatprep.subr.mxu0 %v1008_v3  ;;  %899 = vmatprep.subr.mxu1 %v1008_v3  ;;  %v519_v57 = vld [vmem:[%s1372_s5 + $0x28] sm:$0xff]  ;;  %v518_v59 = vld [vmem:[%s1372_s5 + $0x20] sm:$0xff]  ;;  %v517_v61 = vld [vmem:[%s1372_s5 + $0x18] sm:$0xff] }
  0x27   : > { %865 = vmatpush3.msra.mxu0 %v356_v20  ;;  %900 = vmatpush3.msra.mxu1 %v340_v21  ;;  %v532_v62 = vld [vmem:[%s1373_s6 + $0x10] sm:$0xff]  ;;  %v531_v0 = vld [vmem:[%s1373_s6 + $0x8] sm:$0xff]  ;;  %v530_v2 = vld [vmem:[%s1373_s6] sm:$0xff] }
  0x28   : > { %866 = vmatprep.subr.mxu0 %v1008_v3  ;;  %901 = vmatprep.subr.mxu1 %v1008_v3  ;;  %v516_v63 = vld [vmem:[%s1372_s5 + $0x10] sm:$0xff]  ;;  %v515_v1 = vld [vmem:[%s1372_s5 + $0x8] sm:$0xff]  ;;  %v514_v4 = vld [vmem:[%s1372_s5] sm:$0xff] }
  0x29   : > { %867 = vmatpush3.msra.mxu0 %v355_v22  ;;  %902 = vmatpush3.msra.mxu1 %v339_v23  ;;  %v774_v7 = vld [vmem:[%s1371_s4] ss:$0 sm:$0xff] }
  0x2a   : > { %868 = vmatprep.subr.mxu0 %v1008_v3  ;;  %903 = vmatprep.subr.mxu1 %v1008_v3  ;;  %v775_v13 = vld [vmem:[%s1374_s7] ss:$0 sm:$0xff] }
  0x2b   : > { %869 = vmatpush3.msra.mxu0 %v354_v24  ;;  %904 = vmatpush3.msra.mxu1 %v338_v25 }
  0x2c   : > { %870 = vmatprep.subr.mxu0 %v1008_v3  ;;  %905 = vmatprep.subr.mxu1 %v1008_v3 }
  0x2d   : > { %871 = vmatpush3.msra.mxu0 %v353_v26  ;;  %906 = vmatpush3.msra.mxu1 %v337_v27 }
  0x2e   : > { %872 = vmatprep.subr.mxu0 %v1008_v3  ;;  %907 = vmatprep.subr.mxu1 %v1008_v3 }
  0x2f   : > { %873 = vmatpush3.msra.mxu0 %v352_v28  ;;  %908 = vmatpush3.msra.mxu1 %v336_v29 }
  0x30   : > { %874 = vmatprep.subr.mxu0 %v1008_v3  ;;  %909 = vmatprep.subr.mxu1 %v1008_v3 }
  0x31   : > { %875 = vmatpush3.msra.mxu0 %v351_v30  ;;  %910 = vmatpush3.msra.mxu1 %v335_v31 }
  0x32   : > { %876 = vmatprep.subr.mxu0 %v1008_v3  ;;  %911 = vmatprep.subr.mxu1 %v1008_v3 }
  0x33   : > { %877 = vmatpush3.msra.mxu0 %v350_v32  ;;  %878 = vmatprep.mubr.msk.f32.mxu0 %vm1009_vm0, %v1008_v3 }
  0x34   : > { %912 = vmatpush3.msra.mxu1 %v334_v33  ;;  %913 = vmatprep.mubr.msk.f32.mxu1 %vm1009_vm0, %v1008_v3 }
  0x35   : > { %879 = vmatmul.mubr.f32.vlgmr.msra.gmra.mxu0 %v1209_v34  ;;  %914 = vmatmul.mubr.f32.vlgmr.msra.gmra.mxu1 %v1212_v35 }
  0x36   : > { %916 = vmatprep.subr.mxu0 %v1008_v3  ;;  %951 = vmatprep.subr.mxu1 %v1008_v3 }
  0x37   : > { %917 = vmatpush3.msra.mxu0 %v545_v36  ;;  %952 = vmatpush3.msra.mxu1 %v529_v37 }
  0x38   : > { %918 = vmatprep.subr.mxu0 %v1008_v3  ;;  %953 = vmatprep.subr.mxu1 %v1008_v3 }
  0x39   : > { %919 = vmatpush3.msra.mxu0 %v544_v38  ;;  %954 = vmatpush3.msra.mxu1 %v528_v39 }
  0x3a   : > { %920 = vmatprep.subr.mxu0 %v1008_v3  ;;  %955 = vmatprep.subr.mxu1 %v1008_v3 }
  0x3b   : > { %921 = vmatpush3.msra.mxu0 %v543_v40  ;;  %956 = vmatpush3.msra.mxu1 %v527_v41 }
  0x3c   : > { %922 = vmatprep.subr.mxu0 %v1008_v3  ;;  %957 = vmatprep.subr.mxu1 %v1008_v3 }
  0x3d   : > { %923 = vmatpush3.msra.mxu0 %v542_v42  ;;  %958 = vmatpush3.msra.mxu1 %v526_v43 }
  0x3e   : > { %924 = vmatprep.subr.mxu0 %v1008_v3  ;;  %959 = vmatprep.subr.mxu1 %v1008_v3 }
  0x3f   : > { %925 = vmatpush3.msra.mxu0 %v541_v44  ;;  %960 = vmatpush3.msra.mxu1 %v525_v45 }
  0x40   : > { %926 = vmatprep.subr.mxu0 %v1008_v3  ;;  %961 = vmatprep.subr.mxu1 %v1008_v3 }
  0x41   : > { %927 = vmatpush3.msra.mxu0 %v540_v46  ;;  %962 = vmatpush3.msra.mxu1 %v524_v47 }
  0x42   : > { %928 = vmatprep.subr.mxu0 %v1008_v3  ;;  %963 = vmatprep.subr.mxu1 %v1008_v3 }
  0x43   : > { %929 = vmatpush3.msra.mxu0 %v539_v48  ;;  %964 = vmatpush3.msra.mxu1 %v523_v49 }
  0x44   : > { %930 = vmatprep.subr.mxu0 %v1008_v3  ;;  %965 = vmatprep.subr.mxu1 %v1008_v3 }
  0x45   : > { %931 = vmatpush3.msra.mxu0 %v538_v50  ;;  %966 = vmatpush3.msra.mxu1 %v522_v51 }
  0x46   : > { %932 = vmatprep.subr.mxu0 %v1008_v3  ;;  %967 = vmatprep.subr.mxu1 %v1008_v3 }
  0x47   : > { %933 = vmatpush3.msra.mxu0 %v537_v52  ;;  %968 = vmatpush3.msra.mxu1 %v521_v53 }
  0x48   : > { %934 = vmatprep.subr.mxu0 %v1008_v3  ;;  %969 = vmatprep.subr.mxu1 %v1008_v3 }
  0x49   : > { %935 = vmatpush3.msra.mxu0 %v536_v54  ;;  %970 = vmatpush3.msra.mxu1 %v520_v55 }
  0x4a   : > { %936 = vmatprep.subr.mxu0 %v1008_v3  ;;  %971 = vmatprep.subr.mxu1 %v1008_v3 }
  0x4b   : > { %937 = vmatpush3.msra.mxu0 %v535_v56  ;;  %972 = vmatpush3.msra.mxu1 %v519_v57 }
  0x4c   : > { %938 = vmatprep.subr.mxu0 %v1008_v3  ;;  %973 = vmatprep.subr.mxu1 %v1008_v3 }
  0x4d   : > { %939 = vmatpush3.msra.mxu0 %v534_v58  ;;  %974 = vmatpush3.msra.mxu1 %v518_v59 }
  0x4e   : > { %940 = vmatprep.subr.mxu0 %v1008_v3  ;;  %975 = vmatprep.subr.mxu1 %v1008_v3 }
  0x4f   : > { %941 = vmatpush3.msra.mxu0 %v533_v60  ;;  %976 = vmatpush3.msra.mxu1 %v517_v61 }
  0x50   : > { %942 = vmatprep.subr.mxu0 %v1008_v3  ;;  %977 = vmatprep.subr.mxu1 %v1008_v3 }
  0x51   : > { %943 = vmatpush3.msra.mxu0 %v532_v62  ;;  %978 = vmatpush3.msra.mxu1 %v516_v63 }
  0x52   : > { %944 = vmatprep.subr.mxu0 %v1008_v3  ;;  %979 = vmatprep.subr.mxu1 %v1008_v3 }
  0x53   : > { %945 = vmatpush3.msra.mxu0 %v531_v0  ;;  %980 = vmatpush3.msra.mxu1 %v515_v1 }
  0x54   : > { %946 = vmatprep.subr.mxu0 %v1008_v3  ;;  %981 = vmatprep.subr.mxu1 %v1008_v3 }
  0x55   : > { %947 = vmatpush3.msra.mxu0 %v530_v2  ;;  %948 = vmatprep.mubr.msk.f32.mxu0 %vm1009_vm0, %v1008_v3 }
  0x56   : > { %982 = vmatpush3.msra.mxu1 %v514_v4  ;;  %983 = vmatprep.mubr.msk.f32.mxu1 %vm1009_vm0, %v1008_v3 }
  0x57   : > { %949 = vmatmul.mubr.f32.vlgmr.msra.gmra.mxu0 %v1209_v34  ;;  %984 = vmatmul.mubr.f32.vlgmr.msra.gmra.mxu1 %v1212_v35 }
  0xf5   : > { %v432_v5 = vpop.f32.mrf.mxu0  ;;  %v502_v6 = vpop.f32.mrf.mxu1 }
  0xf6   : > { %v503_v8 = vadd.f32 %v502_v6, %v432_v5 }
  0xf7   : > { %v880_v9 = vpop.f32.mrf.mxu0  ;;  %v915_v10 = vpop.f32.mrf.mxu1 }
  0xf8   : > { %v513_v11 = vadd.f32 %v774_v7, %v503_v8 }
  0xfa   : > { %705 = vst [vmem:[#allocation2] sm:$0xff] %v513_v11  ;;  %706 = vst [vmem:[%s1376_s9] sm:$0xff] %v513_v11 }
 0x117   : > { %v612_v3 = vpop.f32.mrf.mxu0  ;;  %v682_v12 = vpop.f32.mrf.mxu1 }
 0x118   : > { %v683_v14 = vadd.f32 %v682_v12, %v612_v3 }
 0x119   : > { %v950_v15 = vpop.f32.mrf.mxu0  ;;  %v985_v16 = vpop.f32.mrf.mxu1 }
 0x11a   : > { %v693_v17 = vadd.f32 %v775_v13, %v683_v14 }
 0x11c   : > { %694 = vmax.xlane.f32.xlu0 %v693_v17 }
 0x1a5   : > { %v695_v18 = vpop.xlane.xlu0 %694 }
 0x1a6   : > { %v696_v19 = vsub.f32 %v693_v17, %v695_v18 }
 0x1a8   : > { %v697_v20 = vmul.f32 1.442695, %v696_v19 }
 0x1aa   : > { %996 = vpow2.f32 %v697_v20 }
 0x1b7   : > { %v997_v21 = vpop.eup %996 }
 0x1b8   : > { %699 = vadd.xlane.f32.xlu0 %v997_v21 }
 0x241   : > { %v700_v22 = vpop.xlane.xlu0 %699 }
 0x242   : > { %998 = vlog2.f32 %v700_v22 }
 0x24f   : > { %v999_v23 = vpop.eup %998 }
 0x250   : > { %v702_v24 = vmul.f32 0.6931472, %v999_v23 }
 0x252   : > { %v703_v25 = vsub.f32 %v696_v19, %v702_v24 }
 0x254   : > { %704 = vst [vmem:[%s1076_s18] sm:$0xff] %v703_v25 }
 0x255 PF: > { %s20_s30 = sadd.s32 1, %s1006_s30  }
 0x256   : > { %p17_p5 = scmp.ge.s32.totalorder %s20_s30, 10  }
 0x258   :  { %19 = sbr.rel (!%p17_p5) target bundleno = 1 (0x1), region = 94 }

</bundles_post_ra>
